<compile_context>
chip_gen: v7x
topology: tpu7x:2x2x1
jax: 0.10.0
libtpu: 0.0.40
codegen_flags: <defaults>
</compile_context>

<pallas_src>
import functools

import jax
import jax.numpy as jnp
from jax.experimental import pallas as pl
from jax.experimental.pallas import tpu as pltpu

BN_EPS = 1e-5
LEAKY_SLOPE = 0.01
LANE = 128


def _round_up(n, m):
    return ((n + m - 1) // m) * m


def _linear_block_kernel(x_ref, w1_ref, w2_hbm, p_ref, o_ref, w2_vmem, sem,
                         *, inv_b):
    """Fused LeakyReLU(BN(x @ W1)) -> LeakyReLU(BN(. @ W2)).

    x_ref  : [B, Hp]   activations (lane-padded, padded cols are zero)
    w1_ref : [Hp, Hp]  layer-1 weight, (in, out) layout, lane-padded (VMEM)
    w2_hbm : [Hp, Hp]  layer-2 weight, left in HBM; DMA'd manually
    p_ref  : [8, Hp]   rows 0..3 = gamma1, beta1, gamma2, beta2 (padding = 0)
    o_ref  : [B, Hp]   lane-dense f32 output slab
    w2_vmem: [Hp, Hp]  VMEM landing buffer for W2
    sem    : DMA semaphore for the W2 copy
    """
    # Kick off the layer-2 weight DMA immediately so it overlaps layer-1 work.
    w2_cp = pltpu.make_async_copy(w2_hbm, w2_vmem, sem)
    w2_cp.start()

    def bn_lrelu(y, g, be):
        # One-pass training-mode BN stats (biased variance over the batch).
        mean = jnp.sum(y, axis=0, keepdims=True) * inv_b                 # [1, Hp]
        var = jnp.maximum(
            jnp.sum(y * y, axis=0, keepdims=True) * inv_b - mean * mean, 0.0)
        # Fold BN into a single per-feature affine.
        scale = g * jax.lax.rsqrt(var + BN_EPS)                          # [1, Hp]
        shift = be - mean * scale                                        # [1, Hp]
        y = y * scale + shift
        # LeakyReLU (0 < slope < 1): max(y, slope*y) — 2 VPU ops.
        return jnp.maximum(y, LEAKY_SLOPE * y)

    g1, be1 = p_ref[0:1, :], p_ref[1:2, :]
    g2, be2 = p_ref[2:3, :], p_ref[3:4, :]

    # Layer 1: weights already stored in compute dtype; cast activations only.
    w1 = w1_ref[...]
    y = jnp.dot(x_ref[...].astype(w1.dtype), w1,
                preferred_element_type=jnp.float32)
    y = bn_lrelu(y, g1, be1)

    # Layer 2: wait for W2 (DMA overlapped with the work above), then matmul.
    w2_cp.wait()
    w2 = w2_vmem[...]
    y = jnp.dot(y.astype(w2.dtype), w2, preferred_element_type=jnp.float32)
    y = bn_lrelu(y, g2, be2)

    o_ref[...] = y.astype(o_ref.dtype)


def prepare_params(w1, b1, g1, be1, w2, b2, g2, be2, *,
                   pad_to=LANE, weight_dtype=jnp.bfloat16):
    """One-time parameter preparation (hoisted out of the per-step forward).

    - Weights transposed to (in, out) layout, lane-padded on BOTH dims, and
      stored in `weight_dtype` (bf16 by default: half the DMA, native MXU).
    - Linear biases are dropped: training-mode BatchNorm cancels them exactly.
    - The four BN affine vectors are packed into a single [8, Hp] slab.
    """
    del b1, b2  # algebraically cancelled by training-mode BatchNorm
    H = w1.shape[0]
    Hp = _round_up(H, pad_to)
    pad = Hp - H
    w1p = jnp.pad(jnp.transpose(w1), ((0, pad), (0, pad))).astype(weight_dtype)
    w2p = jnp.pad(jnp.transpose(w2), ((0, pad), (0, pad))).astype(weight_dtype)
    params = jnp.zeros((8, Hp), jnp.float32)
    params = params.at[0, :H].set(g1.astype(jnp.float32))
    params = params.at[1, :H].set(be1.astype(jnp.float32))
    params = params.at[2, :H].set(g2.astype(jnp.float32))
    params = params.at[3, :H].set(be2.astype(jnp.float32))
    return w1p, w2p, params


@jax.jit
def linear_block(x, w1p, w2p, params):
    """x: [B, H]; w1p/w2p: [Hp, Hp] (in,out layout); params: [8, Hp] -> [B, H]."""
    B, H = x.shape
    Hp = w1p.shape[1]
    assert w1p.shape == (Hp, Hp) and w2p.shape == (Hp, Hp)
    assert params.shape == (8, Hp)
    assert w1p.dtype == w2p.dtype

    if H != Hp:
        # Lane-pad x's feature dim (zero cols meet W1's zero padded rows: exact).
        x = jnp.pad(x, ((0, 0), (0, Hp - H)))

    wsize = w1p.dtype.itemsize
    xsize = x.dtype.itemsize

    # Explicit VMEM budget (double-buffered inputs/outputs + W2 scratch +
    # generous headroom for matmul / BN f32 temporaries).
    vmem_need = int(2 * B * Hp * xsize          # x
                    + 2 * B * Hp * 4            # out
                    + 2 * Hp * Hp * wsize       # w1
                    + Hp * Hp * wsize           # w2 VMEM scratch
                    + 2 * 8 * Hp * 4            # packed BN params
                    + 8 * B * Hp * 4)           # temporaries headroom
    vmem_limit = min(max(vmem_need, 32 << 20), 64 << 20)

    flops = 4 * B * Hp * Hp                      # two [B,Hp]x[Hp,Hp] matmuls
    bytes_accessed = (B * Hp * xsize             # x
                      + 2 * Hp * Hp * wsize      # W1 + W2
                      + 8 * Hp * 4               # BN params
                      + B * Hp * 4)              # output

    vmem = pl.BlockSpec(memory_space=pltpu.MemorySpace.VMEM)
    out = pl.pallas_call(
        functools.partial(_linear_block_kernel, inv_b=1.0 / B),
        out_shape=jax.ShapeDtypeStruct((B, Hp), jnp.float32),
        in_specs=[vmem,                                   # x
                  vmem,                                   # W1
                  pl.BlockSpec(memory_space=pl.ANY),      # W2 stays in HBM
                  vmem],                                  # packed BN params
        out_specs=vmem,
        scratch_shapes=[pltpu.VMEM((Hp, Hp), w1p.dtype),  # W2 landing buffer
                        pltpu.SemaphoreType.DMA(())],
        compiler_params=pltpu.CompilerParams(vmem_limit_bytes=vmem_limit),
        cost_estimate=pl.CostEstimate(flops=flops, transcendentals=0,
                                      bytes_accessed=bytes_accessed),
    )(x, w1p, w2p, params)

    # Skip the slice (a separate XLA copy) when H is already lane-aligned.
    return out if Hp == H else out[:, :H]


def _reference(x, w1, b1, g1, be1, w2, b2, g2, be2, *,
               matmul_dtype=jnp.float32):
    """Pure-JAX reference mirroring the PyTorch forward (train-mode BN)."""
    def block(h, w, b, g, be):
        y = jnp.dot(h.astype(matmul_dtype), w.T.astype(matmul_dtype),
                    preferred_element_type=jnp.float32) + b
        mean = jnp.mean(y, axis=0, keepdims=True)
        var = jnp.mean((y - mean) ** 2, axis=0, keepdims=True)
        y = (y - mean) / jnp.sqrt(var + BN_EPS) * g + be
        return jnp.where(y >= 0, y, LEAKY_SLOPE * y)
    y = block(x, w1, b1, g1, be1)
    return block(y, w2, b2, g2, be2)


if __name__ == "__main__":
    B = 16            # batch (keep small for the demo; real use: fill the MXU M dim)
    H = 64            # linear_size

    key = jax.random.PRNGKey(0)
    kx, kw1, kb1, kw2, kb2 = jax.random.split(key, 5)

    x = jax.random.normal(kx, (B, H), dtype=jnp.float32)

    # nn.Linear(H, H)-style params (out, in) with uniform(-1/sqrt(H), 1/sqrt(H))
    bound = 1.0 / (H ** 0.5)
    w1 = jax.random.uniform(kw1, (H, H), jnp.float32, -bound, bound)
    b1 = jax.random.uniform(kb1, (H,), jnp.float32, -bound, bound)
    w2 = jax.random.uniform(kw2, (H, H), jnp.float32, -bound, bound)
    b2 = jax.random.uniform(kb2, (H,), jnp.float32, -bound, bound)

    # BatchNorm1d default affine init: gamma = 1, beta = 0
    g1 = jnp.ones((H,), jnp.float32)
    be1 = jnp.zeros((H,), jnp.float32)
    g2 = jnp.ones((H,), jnp.float32)
    be2 = jnp.zeros((H,), jnp.float32)

    # --- f32 weight path: tight check against the f32 reference -------------
    w1p32, w2p32, p32 = jax.block_until_ready(
        prepare_params(w1, b1, g1, be1, w2, b2, g2, be2,
                       weight_dtype=jnp.float32))
    out32 = jax.block_until_ready(linear_block(x, w1p32, w2p32, p32))
    ref32 = _reference(x, w1, b1, g1, be1, w2, b2, g2, be2)
    assert out32.shape == (B, H)
    assert jnp.allclose(out32, ref32, atol=1e-4, rtol=1e-4), "f32 mismatch"

    # --- bf16 weight path (default): check against a bf16-matmul reference --
    w1pb, w2pb, pb = jax.block_until_ready(
        prepare_params(w1, b1, g1, be1, w2, b2, g2, be2))   # bf16 weights
    outb = jax.block_until_ready(linear_block(x, w1pb, w2pb, pb))
    refb = _reference(x, w1, b1, g1, be1, w2, b2, g2, be2,
                      matmul_dtype=jnp.bfloat16)
    assert outb.shape == (B, H)
    assert jnp.allclose(outb, refb, atol=5e-3, rtol=5e-3), "bf16 mismatch"
    # Loose sanity check of the bf16 path against the exact f32 reference.
    assert jnp.allclose(outb, ref32, atol=2e-1, rtol=2e-1), "bf16 drifted"

    print("KERNEL_OK")
</pallas_src>

<mosaic_0001>
module attributes {stable_mosaic.version = 11 : i64} {
  func.func @_linear_block_kernel(%arg0: memref<16x128xf32, #tpu.memory_space<vmem>>, %arg1: memref<128x128xf32, #tpu.memory_space<vmem>>, %arg2: memref<128x128xf32, #tpu.memory_space<any>>, %arg3: memref<8x128xf32, #tpu.memory_space<vmem>>, %arg4: memref<16x128xf32, #tpu.memory_space<vmem>>, %arg5: memref<128x128xf32, #tpu.memory_space<vmem>>, %arg6: memref<!tpu.dma_semaphore, #tpu.memory_space<semaphore_mem>>) attributes {dimension_semantics = [], scalar_prefetch = 0 : i64, scratch_operands = 2 : i64, tpu.core_type = #tpu.core_type<tc>} {
    tpu.enqueue_dma source(%arg2 : memref<128x128xf32, #tpu.memory_space<any>>) target(%arg5 : memref<128x128xf32, #tpu.memory_space<vmem>>) target_semaphore(%arg6 : memref<!tpu.dma_semaphore, #tpu.memory_space<semaphore_mem>>)
    %c0 = arith.constant 0 : index
    %c0_0 = arith.constant 0 : index
    %0 = vector.load %arg3[%c0, %c0_0] : memref<8x128xf32, #tpu.memory_space<vmem>>, vector<1x128xf32>
    %c1 = arith.constant 1 : index
    %c0_1 = arith.constant 0 : index
    %1 = vector.load %arg3[%c1, %c0_1] : memref<8x128xf32, #tpu.memory_space<vmem>>, vector<1x128xf32>
    %c2 = arith.constant 2 : index
    %c0_2 = arith.constant 0 : index
    %2 = vector.load %arg3[%c2, %c0_2] : memref<8x128xf32, #tpu.memory_space<vmem>>, vector<1x128xf32>
    %c3 = arith.constant 3 : index
    %c0_3 = arith.constant 0 : index
    %3 = vector.load %arg3[%c3, %c0_3] : memref<8x128xf32, #tpu.memory_space<vmem>>, vector<1x128xf32>
    %c0_4 = arith.constant 0 : index
    %c0_5 = arith.constant 0 : index
    %4 = vector.load %arg1[%c0_4, %c0_5] : memref<128x128xf32, #tpu.memory_space<vmem>>, vector<128x128xf32>
    %c0_6 = arith.constant 0 : index
    %c0_7 = arith.constant 0 : index
    %5 = vector.load %arg0[%c0_6, %c0_7] : memref<16x128xf32, #tpu.memory_space<vmem>>, vector<16x128xf32>
    %cst = arith.constant dense<0.000000e+00> : vector<16x128xf32>
    %6 = tpu.matmul %5, %4, %cst {dimension_numbers = #tpu.dot_dimension_numbers<[1], [0], [0], [1], [0, 0, 1, 1], [], []>} : vector<16x128xf32>, vector<128x128xf32>, vector<16x128xf32> -> vector<16x128xf32>
    %cst_8 = arith.constant dense<0.000000e+00> : vector<128xf32>
    %7 = vector.multi_reduction <add>, %6, %cst_8 [0] : vector<16x128xf32> to vector<128xf32>
    %8 = vector.shape_cast %7 : vector<128xf32> to vector<1x128xf32>
    %cst_9 = arith.constant 6.250000e-02 : f32
    %9 = vector.broadcast %cst_9 : f32 to vector<1x128xf32>
    %10 = arith.mulf %8, %9 : vector<1x128xf32>
    %11 = arith.mulf %6, %6 : vector<16x128xf32>
    %cst_10 = arith.constant dense<0.000000e+00> : vector<128xf32>
    %12 = vector.multi_reduction <add>, %11, %cst_10 [0] : vector<16x128xf32> to vector<128xf32>
    %13 = vector.shape_cast %12 : vector<128xf32> to vector<1x128xf32>
    %cst_11 = arith.constant 6.250000e-02 : f32
    %14 = vector.broadcast %cst_11 : f32 to vector<1x128xf32>
    %15 = arith.mulf %13, %14 : vector<1x128xf32>
    %16 = arith.mulf %10, %10 : vector<1x128xf32>
    %17 = arith.subf %15, %16 : vector<1x128xf32>
    %cst_12 = arith.constant 0.000000e+00 : f32
    %18 = vector.broadcast %cst_12 : f32 to vector<1x128xf32>
    %19 = arith.maximumf %17, %18 : vector<1x128xf32>
    %cst_13 = arith.constant 9.99999974E-6 : f32
    %20 = vector.broadcast %cst_13 : f32 to vector<1x128xf32>
    %21 = arith.addf %19, %20 : vector<1x128xf32>
    %22 = math.rsqrt %21 : vector<1x128xf32>
    %23 = arith.mulf %0, %22 : vector<1x128xf32>
    %24 = arith.mulf %10, %23 : vector<1x128xf32>
    %25 = arith.subf %1, %24 : vector<1x128xf32>
    %26 = vector.broadcast %23 : vector<1x128xf32> to vector<16x128xf32>
    %27 = arith.mulf %6, %26 : vector<16x128xf32>
    %28 = vector.broadcast %25 : vector<1x128xf32> to vector<16x128xf32>
    %29 = arith.addf %27, %28 : vector<16x128xf32>
    %cst_14 = arith.constant 0.00999999977 : f32
    %30 = vector.broadcast %cst_14 : f32 to vector<16x128xf32>
    %31 = arith.mulf %30, %29 : vector<16x128xf32>
    %32 = arith.maximumf %29, %31 : vector<16x128xf32>
    tpu.wait_dma2 semaphore(%arg6 : memref<!tpu.dma_semaphore, #tpu.memory_space<semaphore_mem>>) src(%arg2 : memref<128x128xf32, #tpu.memory_space<any>>) dst(%arg5 : memref<128x128xf32, #tpu.memory_space<vmem>>)
    %c0_15 = arith.constant 0 : index
    %c0_16 = arith.constant 0 : index
    %33 = vector.load %arg5[%c0_15, %c0_16] : memref<128x128xf32, #tpu.memory_space<vmem>>, vector<128x128xf32>
    %cst_17 = arith.constant dense<0.000000e+00> : vector<16x128xf32>
    %34 = tpu.matmul %32, %33, %cst_17 {dimension_numbers = #tpu.dot_dimension_numbers<[1], [0], [0], [1], [0, 0, 1, 1], [], []>} : vector<16x128xf32>, vector<128x128xf32>, vector<16x128xf32> -> vector<16x128xf32>
    %cst_18 = arith.constant dense<0.000000e+00> : vector<128xf32>
    %35 = vector.multi_reduction <add>, %34, %cst_18 [0] : vector<16x128xf32> to vector<128xf32>
    %36 = vector.shape_cast %35 : vector<128xf32> to vector<1x128xf32>
    %cst_19 = arith.constant 6.250000e-02 : f32
    %37 = vector.broadcast %cst_19 : f32 to vector<1x128xf32>
    %38 = arith.mulf %36, %37 : vector<1x128xf32>
    %39 = arith.mulf %34, %34 : vector<16x128xf32>
    %cst_20 = arith.constant dense<0.000000e+00> : vector<128xf32>
    %40 = vector.multi_reduction <add>, %39, %cst_20 [0] : vector<16x128xf32> to vector<128xf32>
    %41 = vector.shape_cast %40 : vector<128xf32> to vector<1x128xf32>
    %cst_21 = arith.constant 6.250000e-02 : f32
    %42 = vector.broadcast %cst_21 : f32 to vector<1x128xf32>
    %43 = arith.mulf %41, %42 : vector<1x128xf32>
    %44 = arith.mulf %38, %38 : vector<1x128xf32>
    %45 = arith.subf %43, %44 : vector<1x128xf32>
    %cst_22 = arith.constant 0.000000e+00 : f32
    %46 = vector.broadcast %cst_22 : f32 to vector<1x128xf32>
    %47 = arith.maximumf %45, %46 : vector<1x128xf32>
    %cst_23 = arith.constant 9.99999974E-6 : f32
    %48 = vector.broadcast %cst_23 : f32 to vector<1x128xf32>
    %49 = arith.addf %47, %48 : vector<1x128xf32>
    %50 = math.rsqrt %49 : vector<1x128xf32>
    %51 = arith.mulf %2, %50 : vector<1x128xf32>
    %52 = arith.mulf %38, %51 : vector<1x128xf32>
    %53 = arith.subf %3, %52 : vector<1x128xf32>
    %54 = vector.broadcast %51 : vector<1x128xf32> to vector<16x128xf32>
    %55 = arith.mulf %34, %54 : vector<16x128xf32>
    %56 = vector.broadcast %53 : vector<1x128xf32> to vector<16x128xf32>
    %57 = arith.addf %55, %56 : vector<16x128xf32>
    %cst_24 = arith.constant 0.00999999977 : f32
    %58 = vector.broadcast %cst_24 : f32 to vector<16x128xf32>
    %59 = arith.mulf %58, %57 : vector<16x128xf32>
    %60 = arith.maximumf %57, %59 : vector<16x128xf32>
    %c0_25 = arith.constant 0 : index
    %c0_26 = arith.constant 0 : index
    %61 = vector.load %arg4[%c0_25, %c0_26] : memref<16x128xf32, #tpu.memory_space<vmem>>, vector<16x128xf32>
    tpu.vector_store %arg4[%c0_25, %c0_26], %60 {strides = array<i32>} : memref<16x128xf32, #tpu.memory_space<vmem>>, vector<16x128xf32>,
    return
  }
}

</mosaic_0001>

<bundles_post_ra>
// kernel: linear_block.1
= control target key start
LH: loop header
LB: loop body
LE: loop exit
PB: predicated region body
PF: predicated region fallthrough
CT: control target
= control target key end

     0   :  { %9 = vsyncpa [#allocation5], 0  ;;  %s695_s0 = inlined_call_operand.vmem [shape: f32[16,128], index: 0, kind: input, shape index: {}]   ;;  %s696_s1 = inlined_call_operand.hbm [shape: f32[128,128], index: 1, kind: input, shape index: {}]   ;;  %s697_s2 = inlined_call_operand.hbm [shape: f32[128,128], index: 2, kind: input, shape index: {}]   ;;  %s698_s3 = inlined_call_operand.vmem [shape: f32[8,128], index: 3, kind: input, shape index: {}]   ;;  %s699_s4 = inlined_call_operand.hbm [shape: f32[16,128], index: 4, kind: output, shape index: {}]  }
   0x1   :  { %10 = vsyncpa [#allocation6], 0  ;;  %s593_s15 = smov [#allocation4]   ;;  %s521_s19 = scalar_lea.hbm %s696_s1, 2048 }
   0x2   :  { %s18_s16 = sshll.u32 %s593_s15, 4  ;;  %p522_p0 = scmp.ne.s32.totalorder %s696_s1, %s521_s19  ;;  %s19_s16 = int_to_ptr.vmem [resolvable:$true] %s18_s16 }
   0x3   :  { %p525_p1 = scmp.lt.u32.totalorder %s521_s19, %s696_s1 }
   0x5   :  { %p527_p2 = pnand %p525_p1, %p522_p0 }
   0x7   :  { %530 = shalt.err (!%p527_p2)
}
   0x8   :  { %s531_s24 = scalar_lea.vmem %s19_s16, 2048  ;;  %p536_p4 = scmp.lt.s32.totalorder %s19_s16, %s19_s16 }
   0x9   :  { %p532_p3 = scmp.ne.s32.totalorder %s19_s16, %s531_s24  ;;  %p537_p5 = scmp.lt.s32.totalorder %s531_s24, %s531_s24 }
   0xb   :  { %p538_p6 = por %p537_p5, %p536_p4 }
   0xd   :  { %p539_p7 = pnand %p538_p6, %p532_p3 }
   0xf   :  { %542 = shalt.err (!%p539_p7)
}
  0x10   :  { %s594_s25 = smov 128   ;;  %s595_s26 = smov 8  }
  0x11   :  { %24 = dma.hbm_to_vmem [thread:$0]  %s696_s1, 2048, %s19_s16, [#allocation5], %s594_s25, %s594_s25, %s595_s26  }
  0x12   :  { %587 = dma.done.wait [#allocation5], 2048  }
  0x13   :  { %588 = vsyncadd [#allocation5], 4294965248  ;;  %v641_v0 = vld [vmem:[%s698_s3 + $0x2] sm:$0x1]  ;;  %v646_v1 = vld [vmem:[%s698_s3 + $0x3] sm:$0x1] }
  0x14   :  { %v45_v2 = vld [vmem:[#allocation4] sm:$0xff]  ;;  %v46_v3 = vld [vmem:[#allocation4 + $0x8] sm:$0xff]  ;;  %v47_v4 = vld [vmem:[#allocation4 + $0x10] sm:$0xff]  ;;  %s596_s10 = smov [#allocation2]   ;;  %s543_s14 = scalar_lea.hbm %s697_s2, 2048 }
  0x15   :  { %v48_v5 = vld [vmem:[#allocation4 + $0x18] sm:$0xff]  ;;  %v448_v6 = vpack.c.bf16 %v46_v3, %v45_v2  ;;  %v49_v8 = vld [vmem:[#allocation4 + $0x20] sm:$0xff]  ;;  %v50_v9 = vld [vmem:[#allocation4 + $0x28] sm:$0xff]  ;;  %s37_s11 = sshll.u32 %s596_s10, 4  ;;  %p544_p8 = scmp.ne.s32.totalorder %s697_s2, %s543_s14  ;;  %s38_s11 = int_to_ptr.vmem [resolvable:$true] %s37_s11 }
  0x16   :  { %v452_v7 = vpack.c.bf16 %v48_v5, %v47_v4  ;;  %v456_v10 = vpack.c.bf16 %v50_v9, %v49_v8  ;;  %v61_v11 = vld [vmem:[%s695_s0] sm:$0xff]  ;;  %v52_v13 = vld [vmem:[#allocation4 + $0x38] sm:$0xff]  ;;  %v53_v15 = vld [vmem:[#allocation4 + $0x40] sm:$0xff]  ;;  %p547_p9 = scmp.lt.u32.totalorder %s543_s14, %s697_s2 }
  0x17   :  { %449 = vmatprep.subr.bf16.mxu0 %v448_v6  ;;  %v51_v12 = vld [vmem:[#allocation4 + $0x30] sm:$0xff]  ;;  %410 = vmatprep.mubr.f32.mxu0 %v61_v11  ;;  %v54_v16 = vld [vmem:[#allocation4 + $0x48] sm:$0xff]  ;;  %v56_v19 = vld [vmem:[#allocation4 + $0x58] sm:$0xff] }
  0x18   :  { %451 = vmatpush3.bf16.msra.mxu0 %v448_v6  ;;  %v460_v14 = vpack.c.bf16 %v52_v13, %v51_v12  ;;  %v464_v17 = vpack.c.bf16 %v54_v16, %v53_v15  ;;  %v55_v18 = vld [vmem:[#allocation4 + $0x50] sm:$0xff]  ;;  %v57_v21 = vld [vmem:[#allocation4 + $0x60] sm:$0xff]  ;;  %v58_v22 = vld [vmem:[#allocation4 + $0x68] sm:$0xff]  ;;  %p549_p10 = pnand %p547_p9, %p544_p8 }
  0x19   :  { %453 = vmatprep.subr.bf16.mxu0 %v452_v7  ;;  %v468_v20 = vpack.c.bf16 %v56_v19, %v55_v18  ;;  %v472_v23 = vpack.c.bf16 %v58_v22, %v57_v21  ;;  %v59_v24 = vld [vmem:[#allocation4 + $0x70] sm:$0xff]  ;;  %v60_v25 = vld [vmem:[#allocation4 + $0x78] sm:$0xff] }
  0x1a   :  { %v476_v26 = vpack.c.bf16 %v60_v25, %v59_v24  ;;  %v62_v27 = vld [vmem:[%s695_s0 + $0x8] sm:$0xff] }
  0x1c   :  { %455 = vmatpush3.bf16.msra.mxu0 %v452_v7 }
  0x1d   :  { %457 = vmatprep.subr.bf16.mxu0 %v456_v10 }
  0x20   :  { %459 = vmatpush3.bf16.msra.mxu0 %v456_v10 }
  0x21   :  { %461 = vmatprep.subr.bf16.mxu0 %v460_v14 }
  0x24   :  { %463 = vmatpush3.bf16.msra.mxu0 %v460_v14 }
  0x25   :  { %465 = vmatprep.subr.bf16.mxu0 %v464_v17 }
  0x28   :  { %467 = vmatpush3.bf16.msra.mxu0 %v464_v17 }
  0x29   :  { %469 = vmatprep.subr.bf16.mxu0 %v468_v20 }
  0x2c   :  { %471 = vmatpush3.bf16.msra.mxu0 %v468_v20 }
  0x2d   :  { %473 = vmatprep.subr.bf16.mxu0 %v472_v23 }
  0x30   :  { %475 = vmatpush3.bf16.msra.mxu0 %v472_v23 }
  0x31   :  { %477 = vmatprep.subr.bf16.mxu0 %v476_v26 }
  0x34   :  { %479 = vmatpush3.bf16.msra.mxu0 %v476_v26 }
  0x37   :  { %411 = vmatmul.mubr.f32.vlgmr.msra.gmra.mrb[0].mxu0 %v62_v27 }
  0x38   :  { %552 = shalt.err (!%p549_p10)  }
  0x39   :  { %s553_s19 = scalar_lea.vmem %s38_s11, 2048  ;;  %p558_p12 = scmp.lt.s32.totalorder %s38_s11, %s38_s11 }
  0x3a   :  { %p554_p11 = scmp.ne.s32.totalorder %s38_s11, %s553_s19  ;;  %p559_p13 = scmp.lt.s32.totalorder %s553_s19, %s553_s19 }
  0x3c   :  { %p560_p0 = por %p559_p13, %p558_p12 }
  0x3e   :  { %p561_p1 = pnand %p560_p0, %p554_p11 }
  0x40   :  { %564 = shalt.err (!%p561_p1)  }
  0x41   :  { %40 = dma.hbm_to_vmem [thread:$0]  %s697_s2, 2048, %s38_s11, [#allocation3]  ;;  %v164_v52 = vlaneseq  ;;  %v41_v54 = vld [vmem:[%s698_s3] sm:$0x1]  ;;  %v42_v58 = vld [vmem:[%s698_s3 + $0x1] sm:$0x1] }
  0x43   :  { %v165_v53 = vshrl.u32 %v164_v52, 7 }
  0x45   :  { %v669_v55 = vsub.s32 0, %v165_v53 }
 0x10a   :  { %v412_v28 = vpop.f32.mrb[0].mxu0 }
 0x10b   :  { %v147_v29 = vmul.f32 %v412_v28, %v412_v28  ;;  %v129_v30 = vpop.f32.mrb[1].mxu0 }
 0x10c   :  { %v138_v31 = vadd.f32 %v412_v28, %v129_v30  ;;  %v146_v32 = vmul.f32 %v129_v30, %v129_v30 }
 0x10e   :  { %v139_v33 = vrot.slane %v138_v31, 4  ;;  %v148_v34 = vadd.f32 %v147_v29, %v146_v32 }
 0x110   :  { %v140_v35 = vadd.f32 %v139_v33, %v138_v31  ;;  %v149_v36 = vrot.slane %v148_v34, 4 }
 0x112   :  { %v141_v37 = vrot.slane %v140_v35, 2  ;;  %v150_v38 = vadd.f32 %v149_v36, %v148_v34 }
 0x114   :  { %v142_v39 = vadd.f32 %v141_v37, %v140_v35  ;;  %v151_v40 = vrot.slane %v150_v38, 2 }
 0x116   :  { %v143_v41 = vrot.slane %v142_v39, 1  ;;  %v152_v42 = vadd.f32 %v151_v40, %v150_v38 }
 0x118   :  { %v144_v43 = vadd.f32 %v143_v41, %v142_v39  ;;  %v153_v44 = vrot.slane %v152_v42, 1 }
 0x11a   :  { %v145_v45 = vmul.f32 0.0625, %v144_v43  ;;  %v154_v46 = vadd.f32 %v153_v44, %v152_v42 }
 0x11c   :  { %v155_v47 = vmul.f32 0.0625, %v154_v46  ;;  %v156_v48 = vmul.f32 %v145_v45, %v145_v45 }
 0x11e   :  { %v157_v49 = vsub.f32 %v155_v47, %v156_v48 }
 0x120   :  { %v158_v50 = vmax.f32 %v157_v49, 0.0 }
 0x122   :  { %v159_v51 = vadd.f32 1e-05, %v158_v50 }
 0x124   :  { %517 = vrsqrt.f32 %v159_v51 }
 0x12e   :  { %v518_v56 = vpop.eup %517 }
 0x12f   :  { %v161_v57 = vmul.f32 %v518_v56, %v41_v54 }
 0x131   :  { %v162_v59 = vmul.f32 %v161_v57, %v145_v45  ;;  %v167_v60 = vrot.slane %v161_v57, %v669_v55 }
 0x133   :  { %v163_v61 = vsub.f32 %v42_v58, %v162_v59  ;;  %v168_v62 = vmul.f32 %v167_v60, %v129_v30  ;;  %v169_v63 = vmul.f32 %v412_v28, %v167_v60 }
 0x135   :  { %v173_v2 = vrot.slane %v163_v61, %v669_v55 }
 0x137   :  { %v174_v3 = vadd.f32 %v173_v2, %v168_v62  ;;  %v175_v4 = vadd.f32 %v173_v2, %v169_v63 }
 0x139   :  { %v176_v5 = vmul.f32 0.01, %v174_v3  ;;  %v177_v6 = vmul.f32 0.01, %v175_v4 }
 0x13b   :  { %v178_v7 = vmax.f32 %v174_v3, %v176_v5  ;;  %v179_v8 = vmax.f32 %v175_v4, %v177_v6 }
 0x13c   :  { %589 = dma.done.wait [#allocation3], 2048 }
 0x13d   :  { %590 = vsyncadd [#allocation3], 4294965248  ;;  %445 = vmatprep.mubr.f32.mxu1 %v178_v7  ;;  %v183_v9 = vld [vmem:[#allocation2] sm:$0xff]  ;;  %v184_v10 = vld [vmem:[#allocation2 + $0x8] sm:$0xff]  ;;  %s597_s3 = smov [#allocation7]  }
 0x13e   :  { %v185_v11 = vld [vmem:[#allocation2 + $0x10] sm:$0xff]  ;;  %v480_v12 = vpack.c.bf16 %v184_v10, %v183_v9  ;;  %v186_v13 = vld [vmem:[#allocation2 + $0x18] sm:$0xff]  ;;  %v187_v15 = vld [vmem:[#allocation2 + $0x20] sm:$0xff]  ;;  %s323_s24 = sshll.u32 %s597_s3, 4  ;;  %s324_s24 = int_to_ptr.vmem [resolvable:$true] %s323_s24 }
 0x13f   :  { %v484_v14 = vpack.c.bf16 %v186_v13, %v185_v11  ;;  %v188_v16 = vld [vmem:[#allocation2 + $0x28] sm:$0xff]  ;;  %v189_v18 = vld [vmem:[#allocation2 + $0x30] sm:$0xff]  ;;  %v190_v19 = vld [vmem:[#allocation2 + $0x38] sm:$0xff]  ;;  %s565_s27 = scalar_lea.vmem %s324_s24, 256  ;;  %p570_p3 = scmp.lt.s32.totalorder %s324_s24, %s324_s24 }
 0x140   :  { %481 = vmatprep.subr.bf16.mxu1 %v480_v12  ;;  %v488_v17 = vpack.c.bf16 %v188_v16, %v187_v15  ;;  %v492_v20 = vpack.c.bf16 %v190_v19, %v189_v18  ;;  %v191_v21 = vld [vmem:[#allocation2 + $0x40] sm:$0xff]  ;;  %v192_v22 = vld [vmem:[#allocation2 + $0x48] sm:$0xff]  ;;  %v193_v24 = vld [vmem:[#allocation2 + $0x50] sm:$0xff]  ;;  %p566_p2 = scmp.ne.s32.totalorder %s324_s24, %s565_s27  ;;  %p571_p4 = scmp.lt.s32.totalorder %s565_s27, %s565_s27 }
 0x141   :  { %483 = vmatpush3.bf16.msra.mxu1 %v480_v12  ;;  %v496_v23 = vpack.c.bf16 %v192_v22, %v191_v21  ;;  %v194_v25 = vld [vmem:[#allocation2 + $0x58] sm:$0xff]  ;;  %v195_v27 = vld [vmem:[#allocation2 + $0x60] sm:$0xff]  ;;  %v196_v28 = vld [vmem:[#allocation2 + $0x68] sm:$0xff] }
 0x142   :  { %485 = vmatprep.subr.bf16.mxu1 %v484_v14  ;;  %v500_v26 = vpack.c.bf16 %v194_v25, %v193_v24  ;;  %v504_v29 = vpack.c.bf16 %v196_v28, %v195_v27  ;;  %v197_v30 = vld [vmem:[#allocation2 + $0x70] sm:$0xff]  ;;  %v198_v31 = vld [vmem:[#allocation2 + $0x78] sm:$0xff]  ;;  %p572_p5 = por %p571_p4, %p570_p3 }
 0x143   :  { %v508_v32 = vpack.c.bf16 %v198_v31, %v197_v30 }
 0x144   :  { %p573_p6 = pnand %p572_p5, %p566_p2 }
 0x145   :  { %487 = vmatpush3.bf16.msra.mxu1 %v484_v14 }
 0x146   :  { %489 = vmatprep.subr.bf16.mxu1 %v488_v17 }
 0x149   :  { %491 = vmatpush3.bf16.msra.mxu1 %v488_v17 }
 0x14a   :  { %493 = vmatprep.subr.bf16.mxu1 %v492_v20 }
 0x14d   :  { %495 = vmatpush3.bf16.msra.mxu1 %v492_v20 }
 0x14e   :  { %497 = vmatprep.subr.bf16.mxu1 %v496_v23 }
 0x151   :  { %499 = vmatpush3.bf16.msra.mxu1 %v496_v23 }
 0x152   :  { %501 = vmatprep.subr.bf16.mxu1 %v500_v26 }
 0x155   :  { %503 = vmatpush3.bf16.msra.mxu1 %v500_v26 }
 0x156   :  { %505 = vmatprep.subr.bf16.mxu1 %v504_v29 }
 0x159   :  { %507 = vmatpush3.bf16.msra.mxu1 %v504_v29 }
 0x15a   :  { %509 = vmatprep.subr.bf16.mxu1 %v508_v32 }
 0x15d   :  { %511 = vmatpush3.bf16.msra.mxu1 %v508_v32 }
 0x160   :  { %446 = vmatmul.mubr.f32.vlgmr.msra.gmra.mrb[0].mxu1 %v179_v8 }
 0x233   :  { %v447_v33 = vpop.f32.mrb[0].mxu1 }
 0x234   :  { %v283_v34 = vmul.f32 %v447_v33, %v447_v33  ;;  %v265_v35 = vpop.f32.mrb[1].mxu1 }
 0x235   :  { %v274_v36 = vadd.f32 %v447_v33, %v265_v35  ;;  %v282_v37 = vmul.f32 %v265_v35, %v265_v35 }
 0x237   :  { %v275_v38 = vrot.slane %v274_v36, 4  ;;  %v284_v39 = vadd.f32 %v283_v34, %v282_v37 }
 0x239   :  { %v276_v40 = vadd.f32 %v275_v38, %v274_v36  ;;  %v285_v41 = vrot.slane %v284_v39, 4 }
 0x23b   :  { %v277_v42 = vrot.slane %v276_v40, 2  ;;  %v286_v43 = vadd.f32 %v285_v41, %v284_v39 }
 0x23d   :  { %v278_v44 = vadd.f32 %v277_v42, %v276_v40  ;;  %v287_v45 = vrot.slane %v286_v43, 2 }
 0x23f   :  { %v279_v46 = vrot.slane %v278_v44, 1  ;;  %v288_v47 = vadd.f32 %v287_v45, %v286_v43 }
 0x241   :  { %v280_v48 = vadd.f32 %v279_v46, %v278_v44  ;;  %v289_v49 = vrot.slane %v288_v47, 1 }
 0x243   :  { %v281_v50 = vmul.f32 0.0625, %v280_v48  ;;  %v290_v51 = vadd.f32 %v289_v49, %v288_v47 }
 0x245   :  { %v291_v52 = vmul.f32 0.0625, %v290_v51  ;;  %v292_v53 = vmul.f32 %v281_v50, %v281_v50 }
 0x247   :  { %v293_v54 = vsub.f32 %v291_v52, %v292_v53 }
 0x249   :  { %v294_v56 = vmax.f32 %v293_v54, 0.0 }
 0x24b   :  { %v295_v57 = vadd.f32 1e-05, %v294_v56 }
 0x24d   :  { %519 = vrsqrt.f32 %v295_v57 }
 0x257   :  { %v520_v58 = vpop.eup %519 }
 0x258   :  { %v297_v59 = vmul.f32 %v520_v58, %v641_v0 }
 0x25a   :  { %v298_v60 = vmul.f32 %v297_v59, %v281_v50  ;;  %v303_v61 = vrot.slane %v297_v59, %v669_v55 }
 0x25c   :  { %v299_v62 = vsub.f32 %v646_v1, %v298_v60  ;;  %v304_v63 = vmul.f32 %v303_v61, %v265_v35  ;;  %v305_v2 = vmul.f32 %v447_v33, %v303_v61 }
 0x25e   :  { %v309_v3 = vrot.slane %v299_v62, %v669_v55 }
 0x260   :  { %v310_v4 = vadd.f32 %v309_v3, %v304_v63  ;;  %v311_v5 = vadd.f32 %v309_v3, %v305_v2 }
 0x262   :  { %v312_v6 = vmul.f32 0.01, %v310_v4  ;;  %v313_v7 = vmul.f32 0.01, %v311_v5 }
 0x264   :  { %v314_v8 = vmax.f32 %v310_v4, %v312_v6  ;;  %v315_v9 = vmax.f32 %v311_v5, %v313_v7 }
 0x266   :  { %316 = vst [vmem:[#allocation7] sm:$0xff] %v314_v8  ;;  %317 = vst [vmem:[#allocation7 + $0x8] sm:$0xff] %v315_v9 }
 0x267   :  { %576 = shalt.err (!%p573_p6)
}
 0x268   :  { %s577_s30 = scalar_lea.hbm %s699_s4, 256 }
 0x269   :  { %p578_p7 = scmp.ne.s32.totalorder %s699_s4, %s577_s30  ;;  %p581_p8 = scmp.lt.u32.totalorder %s577_s30, %s699_s4 }
 0x26b   :  { %p583_p9 = pnand %p581_p8, %p578_p7 }
 0x26d   :  { %586 = shalt.err (!%p583_p9)
}
 0x26e   :  { %329 = dma.vmem_to_hbm [thread:$0]  %s324_s24, 256, %s699_s4, [#allocation6], %s594_s25, %s594_s25, %s595_s26  }
 0x26f   :  { %591 = dma.done.wait [#allocation6], 256  }
 0x270   :  { %592 = vsyncadd [#allocation6], 4294967040 }
 0x271   :  { %333 = vsyncpa [#allocation5], 1 }
 0x272   :  { %334 = vsyncpa [#allocation6], 1 }
 0x273   :  { %335 = vsyncmov [#allocation3] }
 0x276   :  { %s336_s10 = vpop.sfrf %335 }
 0x277   :  { %p341_p10 = scmp.ne.s32.totalorder %s336_s10, 0 }
 0x279   :  { %340 = shalt.err (%p341_p10)  }

</bundles_post_ra>
